<compile_context>
chip_gen: v7x
topology: tpu7x:2x2x1
jax: 0.10.0
libtpu: 0.0.40
codegen_flags: <defaults>
</compile_context>

<pallas_src>
import jax
import jax.numpy as jnp
from jax.experimental import pallas as pl
from jax.experimental.pallas import tpu as pltpu


def _chomp_copy_kernel(x_ref, o_ref):
    # x_ref: (rows_blk, in_width) in VMEM, o_ref: (rows_blk, L_out) in VMEM.
    # Keep only the first L_out timesteps (drop the "future" causal padding).
    # When in_width == L_out this is a full-tile copy; otherwise a static,
    # lane-0-anchored slice (never crosses an (8,128) tile boundary misaligned).
    l_out = o_ref.shape[-1]
    o_ref[...] = x_ref[:, :l_out]


def _sublane_multiple(dtype) -> int:
    # Sub-32-bit dtypes pack along sublanes: f32->8, bf16->16, int8/fp8->32.
    itemsize = jnp.dtype(dtype).itemsize
    return {4: 8, 2: 16, 1: 32}.get(itemsize, 8)


def _device_kind() -> str:
    try:
        return jax.devices()[0].device_kind.lower()
    except Exception:
        return ""


def chomp1d(x: jax.Array, chomp_size: int, *, force_pallas: bool = False) -> jax.Array:
    """Pallas equivalent of Chomp1d.forward: x[:, :, :-chomp_size].contiguous()."""
    if chomp_size == 0:
        # Practical guard: return x unchanged (PyTorch's x[:, :, :-0] would be
        # empty, which is never the intent in a TCN).
        return x
    assert chomp_size > 0, "chomp_size must be non-negative"
    n, c, l = x.shape
    l_out = l - chomp_size
    assert l_out > 0, "chomp_size must be smaller than the temporal length"

    itemsize = jnp.dtype(x.dtype).itemsize
    rows = n * c

    # Fast path: for tiny tensors the pallas_call launch + grid-step overhead
    # dwarfs the copy; XLA's fused slice is strictly better.
    if not force_pallas and rows * l_out * itemsize < 256 * 1024:
        return x[:, :, :l_out]

    x2 = x.reshape(rows, l)

    # Always read a lane-aligned window of ceil(L_out/128)*128 columns (never
    # the chomped tail) unless the full row is narrower anyway.  A 128-multiple
    # block width always satisfies the lane constraint.
    in_width = min(l, ((l_out + 127) // 128) * 128)

    sub = _sublane_multiple(x.dtype)
    kind = _device_kind()
    is_v5 = "v5" in kind  # lowest HBM BW + 16 MiB scoped VMEM default

    # Buffer depths: 3-deep input on v5e hides DMA issue latency across grid
    # steps; 2-deep elsewhere.
    buffers_in = 3 if is_v5 else 2
    buffers_out = 2

    # Tile sizing: target a few MiB of (in + out) tile per pipeline stage so the
    # ~0.35 us per-grid-step overhead is amortized, while the fully buffered
    # footprint stays under the scoped-VMEM defaults (16 MiB v5e, 32 MiB v6e/v7x).
    stage_budget = (3 if is_v5 else 8) * 1024 * 1024
    per_row_stage = (in_width + l_out) * itemsize
    max_rows_budget = max(sub, stage_budget // max(per_row_stage, 1))
    block_rows = min(rows, max_rows_budget)

    # Guarantee >= 2 balanced grid steps when possible: without it there is no
    # DMA/compute overlap, and on v7x only one of the two TensorCores gets work.
    if rows >= 2 * sub:
        block_rows = min(block_rows, (rows + 1) // 2)

    # Align the sublane axis to the dtype packing multiple (unless the block
    # spans all rows, which is always legal).
    if block_rows != rows:
        block_rows = max(sub, ((block_rows + sub - 1) // sub) * sub)

    grid = (pl.cdiv(rows, block_rows),)

    # Raise the scoped-VMEM limit only if the buffered working set needs it.
    vmem_need = (buffers_in * in_width + buffers_out * l_out) * block_rows * itemsize
    vmem_limit = None
    if vmem_need > 12 * 1024 * 1024:
        vmem_limit = int(min(vmem_need + (4 << 20), 48 << 20))

    # Pure memory op: tell XLA's scheduler exactly how many bytes move.
    cost = pl.CostEstimate(
        flops=0,
        transcendentals=0,
        bytes_accessed=rows * (in_width + l_out) * itemsize,
    )

    if is_v5:
        try:
            in_spec = pl.BlockSpec((block_rows, in_width), lambda i: (i, 0),
                                   pipeline_mode=pl.Buffered(buffers_in))
        except TypeError:  # older jax without pipeline_mode kwarg
            in_spec = pl.BlockSpec((block_rows, in_width), lambda i: (i, 0))
    else:
        in_spec = pl.BlockSpec((block_rows, in_width), lambda i: (i, 0))

    out2 = pl.pallas_call(
        _chomp_copy_kernel,
        out_shape=jax.ShapeDtypeStruct((rows, l_out), x.dtype),
        grid=grid,
        in_specs=[in_spec],
        out_specs=pl.BlockSpec((block_rows, l_out), lambda i: (i, 0)),
        compiler_params=pltpu.CompilerParams(
            dimension_semantics=("parallel",),
            vmem_limit_bytes=vmem_limit,
        ),
        cost_estimate=cost,
    )(x2)

    return out2.reshape(n, c, l_out)


if __name__ == "__main__":
    key = jax.random.PRNGKey(0)

    # Small shape consistent with a TCN-style Chomp1d usage: (N, C, L) = (2, 4, 16)
    N, C, L = 2, 4, 16
    chomp_size = 4  # e.g. (kernel_size - 1) * dilation for a causal conv
    x = jax.random.normal(key, (N, C, L), dtype=jnp.float32)

    # Force the Pallas kernel (the auto path would use the fused-slice fast path
    # for a tensor this tiny).
    out = jax.block_until_ready(chomp1d(x, chomp_size, force_pallas=True))
    ref = x[:, :, :-chomp_size]
    assert out.shape == (N, C, L - chomp_size), out.shape
    assert jnp.array_equal(out, ref), "Pallas Chomp1d mismatch vs reference slice"

    # Auto-dispatch path (fast path for tiny shapes) must agree too.
    out_auto = jax.block_until_ready(chomp1d(x, chomp_size))
    assert jnp.array_equal(out_auto, ref)

    # Second case exercising the narrowed (128-aligned) input read: L_out = 512.
    key2 = jax.random.PRNGKey(1)
    x2 = jax.random.normal(key2, (2, 8, 640), dtype=jnp.float32)
    out2 = jax.block_until_ready(chomp1d(x2, 128, force_pallas=True))
    ref2 = x2[:, :, :-128]
    assert out2.shape == ref2.shape
    assert jnp.array_equal(out2, ref2), "Pallas Chomp1d mismatch (narrowed-read path)"

    print("KERNEL_OK")
</pallas_src>

<mosaic_0001>
module attributes {stable_mosaic.version = 11 : i64} {
  func.func @_chomp_copy_kernel(%arg0: i32, %arg1: memref<8x16xf32, #tpu.memory_space<vmem>>, %arg2: memref<8x12xf32, #tpu.memory_space<vmem>>) attributes {dimension_semantics = [#tpu.dimension_semantics<parallel>], iteration_bounds = array<i64: 1>, scalar_prefetch = 0 : i64, scratch_operands = 0 : i64, tpu.core_type = #tpu.core_type<tc>, window_params = [{transform_indices = @transform_0, window_bounds = array<i64: 8, 16>}, {transform_indices = @transform_1, window_bounds = array<i64: 8, 12>}]} {
    %c0 = arith.constant 0 : index
    %c0_0 = arith.constant 0 : index
    %0 = vector.load %arg1[%c0, %c0_0] : memref<8x16xf32, #tpu.memory_space<vmem>>, vector<8x12xf32>
    %c0_1 = arith.constant 0 : index
    %c0_2 = arith.constant 0 : index
    %1 = vector.load %arg2[%c0_1, %c0_2] : memref<8x12xf32, #tpu.memory_space<vmem>>, vector<8x12xf32>
    tpu.vector_store %arg2[%c0_1, %c0_2], %0 {strides = array<i32>} : memref<8x12xf32, #tpu.memory_space<vmem>>, vector<8x12xf32>,
    return
  }
  func.func @transform_0(%arg0: i32) -> (i32, i32) {
    %c0_i32 = arith.constant 0 : i32
    %c0_i32_0 = arith.constant 0 : i32
    return %arg0, %c0_i32 : i32, i32
  }
  func.func @transform_1(%arg0: i32) -> (i32, i32) {
    %c0_i32 = arith.constant 0 : i32
    %c0_i32_0 = arith.constant 0 : i32
    return %arg0, %c0_i32 : i32, i32
  }
}

</mosaic_0001>

<bundles_post_ra>
// kernel: tpu_custom_call.1
= control target key start
LH: loop header
LB: loop body
LE: loop exit
PB: predicated region body
PF: predicated region fallthrough
CT: control target
= control target key end

     0   :  { %6 = vsyncpa [#allocation3], 0  ;;  %s125_s0 = inlined_call_operand.hbm [shape: f32[8,16], index: 0, kind: input, shape index: {}]   ;;  %s126_s1 = inlined_call_operand.hbm [shape: f32[8,12], index: 1, kind: output, shape index: {}]  }
   0x1   :  { %7 = vsyncpa [#allocation4], 0  ;;  %s89_s6 = smov [#allocation2]   ;;  %s41_s10 = scalar_lea.hbm %s125_s0, 128 }
   0x2   :  { %s14_s7 = sshll.u32 %s89_s6, 4  ;;  %p42_p0 = scmp.ne.s32.totalorder %s125_s0, %s41_s10  ;;  %s15_s7 = int_to_ptr.vmem [resolvable:$true] %s14_s7 }
   0x3   :  { %p45_p1 = scmp.lt.u32.totalorder %s41_s10, %s125_s0 }
   0x5   :  { %p47_p2 = pnand %p45_p1, %p42_p0 }
   0x7   :  { %50 = shalt.err (!%p47_p2)
}
   0x8   :  { %s51_s15 = scalar_lea.vmem %s15_s7, 128  ;;  %p56_p4 = scmp.lt.s32.totalorder %s15_s7, %s15_s7 }
   0x9   :  { %p52_p3 = scmp.ne.s32.totalorder %s15_s7, %s51_s15  ;;  %p57_p5 = scmp.lt.s32.totalorder %s51_s15, %s51_s15 }
   0xb   :  { %p58_p6 = por %p57_p5, %p56_p4 }
   0xd   :  { %p59_p7 = pnand %p58_p6, %p52_p3 }
   0xf   :  { %62 = shalt.err (!%p59_p7)
}
  0x10   :  { %17 = dma.hbm_to_vmem [thread:$0]  %s125_s0, 128, %s15_s7, [#allocation3]  }
  0x11   :  { %85 = dma.done.wait [#allocation3], 128  }
  0x12   :  { %86 = vsyncadd [#allocation3], 4294967168  ;;  %s90_s18 = smov [#allocation5]   ;;  %vm22_vm0 = vcmask 97280   ;;  %v21_v0 = vld [vmem:[#allocation2] sm:$0xff] }
  0x13   :  { %s30_s19 = sshll.u32 %s90_s18, 4  ;;  %23 = vst.msk [vmem:[#allocation5] sm:$0xff] %vm22_vm0, %v21_v0  ;;  %s31_s19 = int_to_ptr.vmem [resolvable:$true] %s30_s19 }
  0x14   :  { %s63_s20 = scalar_lea.vmem %s31_s19, 128  ;;  %p68_p9 = scmp.lt.s32.totalorder %s31_s19, %s31_s19 }
  0x15   :  { %p64_p8 = scmp.ne.s32.totalorder %s31_s19, %s63_s20  ;;  %p69_p10 = scmp.lt.s32.totalorder %s63_s20, %s63_s20 }
  0x17   :  { %p70_p11 = por %p69_p10, %p68_p9 }
  0x19   :  { %p71_p12 = pnand %p70_p11, %p64_p8 }
  0x1b   :  { %74 = shalt.err (!%p71_p12)
}
  0x1c   :  { %s75_s23 = scalar_lea.hbm %s126_s1, 128 }
  0x1d   :  { %p76_p13 = scmp.ne.s32.totalorder %s126_s1, %s75_s23  ;;  %p79_p0 = scmp.lt.u32.totalorder %s75_s23, %s126_s1 }
  0x1f   :  { %p81_p1 = pnand %p79_p0, %p76_p13 }
  0x21   :  { %84 = shalt.err (!%p81_p1)
}
  0x22   :  { %33 = dma.vmem_to_hbm [thread:$0]  %s31_s19, 128, %s126_s1, [#allocation4]  }
  0x23   :  { %87 = dma.done.wait [#allocation4], 128  }
  0x24   :  { %88 = vsyncadd [#allocation4], 4294967168 }
  0x25   :  { %37 = vsyncpa [#allocation3], 1 }
  0x26   :  { %38 = vsyncpa [#allocation4], 1 }

</bundles_post_ra>
